<compile_context>
chip_gen: v7x
topology: tpu7x:2x2x1
jax: 0.10.0
libtpu: 0.0.40
codegen_flags: <defaults>
</compile_context>

<pallas_src>
import functools

import jax
import jax.numpy as jnp
from jax.experimental import pallas as pl
from jax.experimental.pallas import tpu as pltpu

_EPS = 1e-5
_LANES = 128


# ----------------------------- Pallas kernel ------------------------------ #

def _landmark_kernel(x_ref,
                     w1_ref, b1_ref,
                     w2_ref, b2_ref,
                     w3_ref, b3_ref,
                     o_ref):
    """Fused 3x (Linear with folded-BatchNorm -> ReLU) on one batch tile.

    Weights are bf16, biases f32; all matmuls accumulate in f32 on the MXU.
    Padded hidden lanes stay exactly zero: relu(0 @ W + 0) == 0.
    """
    x = x_ref[...].astype(jnp.bfloat16)                               # (TB, 66)

    # Layer 1: (TB,66) @ (66,128) ; live cols 0..32.
    h = jnp.dot(x, w1_ref[...], preferred_element_type=jnp.float32) + b1_ref[...]
    h = jnp.maximum(h, 0.0).astype(jnp.bfloat16)

    # Layer 2: (TB,128) @ (128,128) ; live cols 0..32.
    h = jnp.dot(h, w2_ref[...], preferred_element_type=jnp.float32) + b2_ref[...]
    h = jnp.maximum(h, 0.0).astype(jnp.bfloat16)

    # Layer 3: (TB,128) @ (128,16) -> f32 output.
    h = jnp.dot(h, w3_ref[...], preferred_element_type=jnp.float32) + b3_ref[...]
    h = jnp.maximum(h, 0.0)

    o_ref[...] = h.astype(o_ref.dtype)


# ------------------------------ JAX wrapper ------------------------------- #

def _round_up(x, m):
    return (x + m - 1) // m * m


def _choose_tile(batch, max_rows_per_tile):
    """Batch tile: multiple of 8 sublanes, and >=2 grid steps when B > 8 so
    the 'parallel' axis actually shards across v7x's two TensorCores."""
    if batch <= 8:
        return 8
    rows_per_core = _round_up(pl.cdiv(batch, 2), 8)
    return max(8, min(max_rows_per_tile, rows_per_core))


def prepare_params(raw_params):
    """Fold eval-mode BatchNorm into each Linear, pad hidden dims to 128 lanes,
    and cast the fused weights to bf16 (biases stay f32).

    raw_params: tuple of per-layer (w (F_in,F_out), b (F_out,),
                                    gamma, beta, running_mean, running_var).
    Returns tuple of per-layer (W_bf16_padded, b_f32_padded(1,F)).
    """
    n_layers = len(raw_params)
    fused = []
    for li, (w, b, gamma, beta, mean, var) in enumerate(raw_params):
        scale = gamma / jnp.sqrt(var + _EPS)                  # (F_out,)
        shift = beta - mean * scale                           # (F_out,)
        wf = (w * scale[None, :]).astype(jnp.float32)         # (F_in, F_out)
        bf = (b * scale + shift).astype(jnp.float32)          # (F_out,)

        f_in, f_out = wf.shape
        pad_in = _LANES if li > 0 else f_in                   # hidden acts are 128 lanes
        pad_out = _LANES if li < n_layers - 1 else f_out      # keep real output width
        wp = jnp.zeros((pad_in, pad_out), jnp.float32).at[:f_in, :f_out].set(wf)
        bp = jnp.zeros((1, pad_out), jnp.float32).at[0, :f_out].set(bf)
        fused.append((wp.astype(jnp.bfloat16), bp))
    return tuple(fused)


def _fused_mlp(x, fused_params):
    """Plain-jnp version of the fused kernel math (bf16 matmuls, f32 accum).
    Used for the small-batch fallback and as a tight reference."""
    h = x.astype(jnp.bfloat16)
    n = len(fused_params)
    for li, (w, b) in enumerate(fused_params):
        h = jnp.maximum(jnp.dot(h, w, preferred_element_type=jnp.float32) + b, 0.0)
        if li < n - 1:
            h = h.astype(jnp.bfloat16)
    return h


@functools.partial(jax.jit,
                   static_argnames=("max_rows_per_tile", "small_batch_rows"))
def landmark_unit_forward(face_landmarks, fused_params, *,
                          max_rows_per_tile=4096, small_batch_rows=256):
    """face_landmarks: (B, 33, 2) float/bf16 array. Returns (B, 16) float32."""
    B = face_landmarks.shape[0]
    x = face_landmarks.reshape(B, -1)
    if x.dtype != jnp.bfloat16:          # accept bf16 inputs as-is (halves input HBM)
        x = x.astype(jnp.float32)
    f_in = x.shape[1]

    (w1, b1), (w2, b2), (w3, b3) = fused_params
    f_out = w3.shape[1]

    # Small batches: pallas launch + DMA latency dominates -> let XLA fuse it.
    if B < small_batch_rows:
        return _fused_mlp(x, fused_params)

    tb = _choose_tile(B, max_rows_per_tile)
    grid = pl.cdiv(B, tb)                # ragged last block; no HBM-side padding

    out = pl.pallas_call(
        _landmark_kernel,
        out_shape=jax.ShapeDtypeStruct((B, f_out), jnp.float32),
        grid_spec=pl.GridSpec(
            grid=(grid,),
            in_specs=[
                pl.BlockSpec((tb, f_in), lambda i: (i, 0)),     # x: batch-tiled
                pl.BlockSpec(w1.shape, lambda i: (0, 0)),       # weights: VMEM-resident
                pl.BlockSpec(b1.shape, lambda i: (0, 0)),
                pl.BlockSpec(w2.shape, lambda i: (0, 0)),
                pl.BlockSpec(b2.shape, lambda i: (0, 0)),
                pl.BlockSpec(w3.shape, lambda i: (0, 0)),
                pl.BlockSpec(b3.shape, lambda i: (0, 0)),
            ],
            out_specs=pl.BlockSpec((tb, f_out), lambda i: (i, 0)),
        ),
        compiler_params=pltpu.CompilerParams(
            dimension_semantics=("parallel",),                  # megacore batch split
        ),
    )(x, w1, b1, w2, b2, w3, b3)

    return out


# --------------------------- Parameter creation ---------------------------- #

def make_raw_params(key, feature_size=66):
    """Deterministic synthetic parameters matching the PyTorch module shapes."""
    h = feature_size // 2   # 33
    q = feature_size // 4   # 16
    dims = [(feature_size, h), (h, h), (h, q)]

    keys = jax.random.split(key, 6 * len(dims))
    raw = []
    for li, (f_in, f_out) in enumerate(dims):
        k = keys[6 * li: 6 * (li + 1)]
        bound = 1.0 / jnp.sqrt(f_in)
        w = jax.random.uniform(k[0], (f_in, f_out), jnp.float32, -bound, bound)
        b = jax.random.uniform(k[1], (f_out,), jnp.float32, -bound, bound)
        gamma = 1.0 + 0.1 * jax.random.normal(k[2], (f_out,), jnp.float32)
        beta = 0.1 * jax.random.normal(k[3], (f_out,), jnp.float32)
        mean = 0.1 * jax.random.normal(k[4], (f_out,), jnp.float32)
        var = 1.0 + 0.1 * jnp.abs(jax.random.normal(k[5], (f_out,), jnp.float32))
        raw.append((w, b, gamma, beta, mean, var))
    return tuple(raw)


# --------------------------- Pure-JAX references ---------------------------- #

def reference_forward(face_landmarks, raw_params):
    """Unfused f32 Linear -> BatchNorm1d(eval) -> ReLU -> Dropout(eval=id)."""
    B = face_landmarks.shape[0]
    h = face_landmarks.reshape(B, -1).astype(jnp.float32)
    for (w, b, gamma, beta, mean, var) in raw_params:
        h = h @ w + b
        h = (h - mean) / jnp.sqrt(var + _EPS) * gamma + beta
        h = jnp.maximum(h, 0.0)
    return h


# --------------------------------- Main ------------------------------------ #

if __name__ == "__main__":
    key = jax.random.PRNGKey(0)
    k_in, k_par = jax.random.split(key)

    batch = 10   # non-multiple-of-8 batch exercises the ragged-last-block path
    # x['face-landmarks'] : (batch, 33, 2) -> flattened to (batch, 66)
    face_landmarks = jax.random.normal(k_in, (batch, 33, 2), jnp.float32)

    raw_params = make_raw_params(k_par, feature_size=66)
    fused_params = prepare_params(raw_params)

    # Force the Pallas path even at this tiny demo batch (disable XLA fallback).
    out = landmark_unit_forward(face_landmarks, fused_params, small_batch_rows=0)
    out = jax.block_until_ready(out)
    assert out.shape == (batch, 16), out.shape

    # Tight check vs a plain-jnp emulation of the exact fused bf16 math.
    ref_bf16 = _fused_mlp(face_landmarks.reshape(batch, -1).astype(jnp.float32),
                          fused_params)
    assert jnp.allclose(out, ref_bf16, atol=2e-3, rtol=2e-3), \
        "mismatch vs bf16 fused reference"

    # Loose check vs the unfused f32 reference (bf16 weights/activations).
    ref_f32 = reference_forward(face_landmarks, raw_params)
    assert jnp.allclose(out, ref_f32, atol=5e-2, rtol=5e-2), \
        "mismatch vs f32 reference"

    # Default config uses the small-batch XLA fallback at B=10; must agree too.
    out_fb = jax.block_until_ready(landmark_unit_forward(face_landmarks, fused_params))
    assert jnp.allclose(out, out_fb, atol=2e-3, rtol=2e-3), \
        "pallas path vs small-batch fallback mismatch"

    print("KERNEL_OK")
</pallas_src>

<mosaic_0001>
module attributes {stable_mosaic.version = 11 : i64} {
  func.func @_landmark_kernel(%arg0: i32, %arg1: memref<8x66xf32, #tpu.memory_space<vmem>>, %arg2: memref<66x128xbf16, #tpu.memory_space<vmem>>, %arg3: memref<1x128xf32, #tpu.memory_space<vmem>>, %arg4: memref<128x128xbf16, #tpu.memory_space<vmem>>, %arg5: memref<1x128xf32, #tpu.memory_space<vmem>>, %arg6: memref<128x16xbf16, #tpu.memory_space<vmem>>, %arg7: memref<1x16xf32, #tpu.memory_space<vmem>>, %arg8: memref<8x16xf32, #tpu.memory_space<vmem>>) attributes {dimension_semantics = [#tpu.dimension_semantics<parallel>], iteration_bounds = array<i64: 2>, scalar_prefetch = 0 : i64, scratch_operands = 0 : i64, tpu.core_type = #tpu.core_type<tc>, window_params = [{transform_indices = @transform_0, window_bounds = array<i64: 8, 66>}, {pipeline_mode = #tpu.pipeline_mode<synchronous>, transform_indices = @transform_1, window_bounds = array<i64: 66, 128>}, {pipeline_mode = #tpu.pipeline_mode<synchronous>, transform_indices = @transform_2, window_bounds = array<i64: 1, 128>}, {pipeline_mode = #tpu.pipeline_mode<synchronous>, transform_indices = @transform_3, window_bounds = array<i64: 128, 128>}, {pipeline_mode = #tpu.pipeline_mode<synchronous>, transform_indices = @transform_4, window_bounds = array<i64: 1, 128>}, {pipeline_mode = #tpu.pipeline_mode<synchronous>, transform_indices = @transform_5, window_bounds = array<i64: 128, 16>}, {pipeline_mode = #tpu.pipeline_mode<synchronous>, transform_indices = @transform_6, window_bounds = array<i64: 1, 16>}, {transform_indices = @transform_7, window_bounds = array<i64: 8, 16>}]} {
    %c0 = arith.constant 0 : index
    %c0_0 = arith.constant 0 : index
    %0 = vector.load %arg1[%c0, %c0_0] : memref<8x66xf32, #tpu.memory_space<vmem>>, vector<8x66xf32>
    %1 = arith.truncf %0 : vector<8x66xf32> to vector<8x66xbf16>
    %c0_1 = arith.constant 0 : index
    %c0_2 = arith.constant 0 : index
    %2 = vector.load %arg2[%c0_1, %c0_2] : memref<66x128xbf16, #tpu.memory_space<vmem>>, vector<66x128xbf16>
    %cst = arith.constant dense<0.000000e+00> : vector<8x128xf32>
    %3 = tpu.matmul %1, %2, %cst {dimension_numbers = #tpu.dot_dimension_numbers<[1], [0], [0], [1], [0, 0, 1, 1], [], []>} : vector<8x66xbf16>, vector<66x128xbf16>, vector<8x128xf32> -> vector<8x128xf32>
    %c0_3 = arith.constant 0 : index
    %c0_4 = arith.constant 0 : index
    %4 = vector.load %arg3[%c0_3, %c0_4] : memref<1x128xf32, #tpu.memory_space<vmem>>, vector<1x128xf32>
    %5 = vector.broadcast %4 : vector<1x128xf32> to vector<8x128xf32>
    %6 = arith.addf %3, %5 : vector<8x128xf32>
    %cst_5 = arith.constant 0.000000e+00 : f32
    %7 = vector.broadcast %cst_5 : f32 to vector<8x128xf32>
    %8 = arith.maximumf %6, %7 : vector<8x128xf32>
    %9 = arith.truncf %8 : vector<8x128xf32> to vector<8x128xbf16>
    %c0_6 = arith.constant 0 : index
    %c0_7 = arith.constant 0 : index
    %10 = vector.load %arg4[%c0_6, %c0_7] : memref<128x128xbf16, #tpu.memory_space<vmem>>, vector<128x128xbf16>
    %cst_8 = arith.constant dense<0.000000e+00> : vector<8x128xf32>
    %11 = tpu.matmul %9, %10, %cst_8 {dimension_numbers = #tpu.dot_dimension_numbers<[1], [0], [0], [1], [0, 0, 1, 1], [], []>} : vector<8x128xbf16>, vector<128x128xbf16>, vector<8x128xf32> -> vector<8x128xf32>
    %c0_9 = arith.constant 0 : index
    %c0_10 = arith.constant 0 : index
    %12 = vector.load %arg5[%c0_9, %c0_10] : memref<1x128xf32, #tpu.memory_space<vmem>>, vector<1x128xf32>
    %13 = vector.broadcast %12 : vector<1x128xf32> to vector<8x128xf32>
    %14 = arith.addf %11, %13 : vector<8x128xf32>
    %cst_11 = arith.constant 0.000000e+00 : f32
    %15 = vector.broadcast %cst_11 : f32 to vector<8x128xf32>
    %16 = arith.maximumf %14, %15 : vector<8x128xf32>
    %17 = arith.truncf %16 : vector<8x128xf32> to vector<8x128xbf16>
    %c0_12 = arith.constant 0 : index
    %c0_13 = arith.constant 0 : index
    %18 = vector.load %arg6[%c0_12, %c0_13] : memref<128x16xbf16, #tpu.memory_space<vmem>>, vector<128x16xbf16>
    %cst_14 = arith.constant dense<0.000000e+00> : vector<8x16xf32>
    %19 = tpu.matmul %17, %18, %cst_14 {dimension_numbers = #tpu.dot_dimension_numbers<[1], [0], [0], [1], [0, 0, 1, 1], [], []>} : vector<8x128xbf16>, vector<128x16xbf16>, vector<8x16xf32> -> vector<8x16xf32>
    %c0_15 = arith.constant 0 : index
    %c0_16 = arith.constant 0 : index
    %20 = vector.load %arg7[%c0_15, %c0_16] : memref<1x16xf32, #tpu.memory_space<vmem>>, vector<1x16xf32>
    %21 = vector.broadcast %20 : vector<1x16xf32> to vector<8x16xf32>
    %22 = arith.addf %19, %21 : vector<8x16xf32>
    %cst_17 = arith.constant 0.000000e+00 : f32
    %23 = vector.broadcast %cst_17 : f32 to vector<8x16xf32>
    %24 = arith.maximumf %22, %23 : vector<8x16xf32>
    %c0_18 = arith.constant 0 : index
    %c0_19 = arith.constant 0 : index
    %25 = vector.load %arg8[%c0_18, %c0_19] : memref<8x16xf32, #tpu.memory_space<vmem>>, vector<8x16xf32>
    tpu.vector_store %arg8[%c0_18, %c0_19], %24 {strides = array<i32>} : memref<8x16xf32, #tpu.memory_space<vmem>>, vector<8x16xf32>,
    return
  }
  func.func @transform_0(%arg0: i32) -> (i32, i32) {
    %c0_i32 = arith.constant 0 : i32
    %c0_i32_0 = arith.constant 0 : i32
    return %arg0, %c0_i32 : i32, i32
  }
  func.func @transform_1(%arg0: i32) -> (i32, i32) {
    %c0_i32 = arith.constant 0 : i32
    %c0_i32_0 = arith.constant 0 : i32
    %c0_i32_1 = arith.constant 0 : i32
    return %c0_i32, %c0_i32_0 : i32, i32
  }
  func.func @transform_2(%arg0: i32) -> (i32, i32) {
    %c0_i32 = arith.constant 0 : i32
    %c0_i32_0 = arith.constant 0 : i32
    %c0_i32_1 = arith.constant 0 : i32
    return %c0_i32, %c0_i32_0 : i32, i32
  }
  func.func @transform_3(%arg0: i32) -> (i32, i32) {
    %c0_i32 = arith.constant 0 : i32
    %c0_i32_0 = arith.constant 0 : i32
    %c0_i32_1 = arith.constant 0 : i32
    return %c0_i32, %c0_i32_0 : i32, i32
  }
  func.func @transform_4(%arg0: i32) -> (i32, i32) {
    %c0_i32 = arith.constant 0 : i32
    %c0_i32_0 = arith.constant 0 : i32
    %c0_i32_1 = arith.constant 0 : i32
    return %c0_i32, %c0_i32_0 : i32, i32
  }
  func.func @transform_5(%arg0: i32) -> (i32, i32) {
    %c0_i32 = arith.constant 0 : i32
    %c0_i32_0 = arith.constant 0 : i32
    %c0_i32_1 = arith.constant 0 : i32
    return %c0_i32, %c0_i32_0 : i32, i32
  }
  func.func @transform_6(%arg0: i32) -> (i32, i32) {
    %c0_i32 = arith.constant 0 : i32
    %c0_i32_0 = arith.constant 0 : i32
    %c0_i32_1 = arith.constant 0 : i32
    return %c0_i32, %c0_i32_0 : i32, i32
  }
  func.func @transform_7(%arg0: i32) -> (i32, i32) {
    %c0_i32 = arith.constant 0 : i32
    %c0_i32_0 = arith.constant 0 : i32
    return %arg0, %c0_i32 : i32, i32
  }
}

</mosaic_0001>

<bundles_post_ra>
// kernel: landmark_unit_forward.1
= control target key start
LH: loop header
LB: loop body
LE: loop exit
PB: predicated region body
PF: predicated region fallthrough
CT: control target
= control target key end

     0   :  { %12 = vsyncpa [#allocation3], 0  ;;  %s1151_s0 = inlined_call_operand.vmem [shape: f32[10,66], index: 0, kind: input, shape index: {}]   ;;  %s1152_s1 = inlined_call_operand.vmem [shape: bf16[66,128], index: 1, kind: input, shape index: {}]   ;;  %s1153_s2 = inlined_call_operand.vmem [shape: f32[1,128], index: 2, kind: input, shape index: {}]   ;;  %s1154_s3 = inlined_call_operand.vmem [shape: bf16[128,128], index: 3, kind: input, shape index: {}]   ;;  %s1155_s4 = inlined_call_operand.vmem [shape: f32[1,128], index: 4, kind: input, shape index: {}]   ;;  %s1156_s5 = inlined_call_operand.vmem [shape: bf16[128,16], index: 5, kind: input, shape index: {}]   ;;  %s1157_s6 = inlined_call_operand.vmem [shape: f32[1,16], index: 6, kind: input, shape index: {}]   ;;  %s1158_s7 = inlined_call_operand.hbm [shape: f32[10,16], index: 7, kind: output, shape index: {}]  }
   0x1   :  { %14 = vsyncpa [#allocation3 + $0x1], 0  ;;  %s952_s24 = smov 0   ;;  %s954_s25 = smov 0  }
   0x2   :  { %s956_s26 = smov 0   ;;  %s958_s27 = smov 0  }
   0x3 LB: > { %s973_s28 = sadd.s32 4294967295, %s907_s27   ;;  %s670_s29 = sadd.s32 4294967294, %s907_s27   ;;  %s907_s27 = sphi %s958_s27, %s1164_s27   ;;  %s903_s26 = sphi %s956_s26, %s1163_s26   ;;  %s899_s25 = sphi %s954_s25, %s1162_s25   ;;  %s895_s24 = sphi %s952_s24, %s1161_s24  }
   0x4   : > { %s977_s30 = sadd.s32 1, %s907_s27   ;;  %s179_s8 = sadd.s32 1, %s903_s26 }
   0x5   : > { %s176_s9 = ssub.s32 %s907_s27, %s977_s30  ;;  %p189_p0 = scmp.ne.s32.totalorder %s903_s26, %s899_s25 }
   0x6   : > { %p177_p1 = scmp.eq.s32.totalorder %s176_s9, 0  ;;  %p190_p2 = scmp.eq.s32.totalorder %s973_s28, 1 }
   0x7   : > { %p195_p3 = scmp.ne.s32.totalorder %s899_s25, %s895_s24  ;;  %p196_p4 = scmp.eq.s32.totalorder %s670_s29, 1 }
   0x8   : > { %s988_s10 = scalar_select %p177_p1, %s903_s26, %s179_s8  }
   0x9   : > { %p990_p5 = por %p190_p2, %p189_p0  ;;  %p994_p6 = por %p196_p4, %p195_p3 }
   0xa   : > { %p673_p7 = scmp.ge.s32.totalorder %s907_s27, 1  ;;  %p239_p8 = scmp.lt.s32.totalorder %s907_s27, 3 }
   0xc   : > { %p240_p9 = pnand %p673_p7, %p239_p8 }
   0xd   : > { %v824_v0 = vld [vmem:[%s1152_s1] sm:$0xff] (!%p240_p9)   ;;  %v909_v1 = vmov (!%p240_p9), 0.0   ;;  %v825_v2 = vld [vmem:[%s1152_s1 + $0x8] sm:$0xff] (!%p240_p9)   ;;  %vm910_vm0 = vmmov (!%p240_p9), 0   ;;  %p270_p10 = scmp.lt.s32.totalorder (!%p240_p9), %s973_s28, 1  ;;  %v826_v5 = vld [vmem:[%s1152_s1 + $0x10] sm:$0xff] (!%p240_p9)  }
   0xe   : > { %243 = sbr.rel (%p240_p9) target bundleno = 700 (0x2bc), region = 48  ;;  %729 = vmatprep.subr.bf16.mxu0 (!%p240_p9), %v909_v1  ;;  %743 = vmatprep.subr.bf16.mxu1 (!%p240_p9), %v909_v1  ;;  %v828_v3 = vld [vmem:[%s1152_s1 + $0x20] ss:$0 sps:$4 sm:$0x11] (!%p240_p9)   ;;  %v830_v6 = vld [vmem:[%s1154_s3 + $0x8] sm:$0xff] (!%p240_p9)   ;;  %vm324_vm1 = vcmask (!%p240_p9), 1040384  }
   0xf   : > { %730 = vmatpush3.bf16.msra.mxu0 (!%p240_p9), %v824_v0  ;;  %739 = vmatprep.mubr.msk.bf16.mxu0 (!%p240_p9), %vm910_vm0, %v909_v1  ;;  %v829_v4 = vld [vmem:[%s1154_s3] sm:$0xff] (!%p240_p9)   ;;  %v827_v7 = vld [vmem:[%s1152_s1 + $0x18] sm:$0xff] (!%p240_p9)   ;;  %v326_v8 = vsel (!%p240_p9), %vm324_vm1, %v828_v3, 0  ;;  %v831_v9 = vld [vmem:[%s1154_s3 + $0x10] sm:$0xff] (!%p240_p9)   ;;  %vm320_vm2 = vcmask (!%p240_p9), 539648   ;;  %s267_s22 = sand.u32 (!%p240_p9), 1, %s899_s25  }
  0x10   : > { %731 = vmatprep.subr.bf16.mxu0 (!%p240_p9), %v909_v1  ;;  %759 = vmatprep.mubr.msk.bf16.mxu1 (!%p240_p9), %vm910_vm0, %v909_v1  ;;  %v832_v11 = vld [vmem:[%s1154_s3 + $0x18] sm:$0xff] (!%p240_p9)   ;;  %v833_v13 = vld [vmem:[%s1154_s3 + $0x20] sm:$0xff] (!%p240_p9)   ;;  %v834_v14 = vld [vmem:[%s1154_s3 + $0x28] sm:$0xff] (!%p240_p9)   ;;  %s674_s23 = sshll.u32 (!%p240_p9), %s267_s22, 3  ;;  %s702_s9 = sshll.u32 (!%p240_p9), %s973_s28, 7  ;;  %vm595_vm3 = vcmask (!%p240_p9), 130048  }
  0x11   : > { %744 = vmatpush3.bf16.msra.mxu1 (!%p240_p9), %v829_v4  ;;  %v835_v15 = vld [vmem:[%s1154_s3 + $0x30] sm:$0xff] (!%p240_p9)   ;;  %v836_v16 = vld [vmem:[%s1154_s3 + $0x38] sm:$0xff] (!%p240_p9)   ;;  %v837_v17 = vld [vmem:[%s1156_s5] sm:$0xff] (!%p240_p9)   ;;  %s269_s13 = scalar_lea.vmem (!%p240_p9), [#allocation2], %s674_s23  ;;  %s1109_s17 = scalar_lea.hbm (!%p240_p9), %s1158_s7, %s702_s9 }
  0x12   : > { %745 = vmatprep.subr.bf16.mxu1 (!%p240_p9), %v909_v1  ;;  %v838_v18 = vld [vmem:[%s1156_s5 + $0x8] sm:$0xff] (!%p240_p9)   ;;  %v839_v19 = vld [vmem:[%s1156_s5 + $0x10] sm:$0xff] (!%p240_p9)   ;;  %v840_v20 = vld [vmem:[%s1156_s5 + $0x18] sm:$0xff] (!%p240_p9)   ;;  %s611_s14 = sshll.u32 (!%p240_p9), %s269_s13, 4  ;;  %s1111_s14 = int_to_ptr.vmem [resolvable:$true] %s611_s14 }
  0x13   : > { %732 = vmatpush3.bf16.msra.mxu0 (!%p240_p9), %v825_v2  ;;  %v841_v21 = vld [vmem:[%s1156_s5 + $0x20] sm:$0xff] (!%p240_p9)   ;;  %v842_v22 = vld [vmem:[%s1156_s5 + $0x28] sm:$0xff] (!%p240_p9)   ;;  %v843_v31 = vld [vmem:[%s1156_s5 + $0x30] sm:$0xff] (!%p240_p9)   ;;  %s845_s18 = scalar_lea.vmem (!%p240_p9), %s1111_s14, 128 }
  0x14   : > { %733 = vmatprep.subr.bf16.mxu0 (!%p240_p9), %v909_v1  ;;  %v676_v23 = vld [vmem:[%s1153_s2] ss:$0 sm:$0xff] (!%p240_p9)  ;;  %v844_v32 = vld [vmem:[%s1156_s5 + $0x38] sm:$0xff] (!%p240_p9)   ;;  %p846_p11 = scmp.ne.s32.totalorder (!%p240_p9), %s1111_s14, %s845_s18 }
  0x15   : > { %s271_s19 = scalar_select %p270_p10, %s973_s28, 1  ;;  %746 = vmatpush3.bf16.msra.mxu1 %v830_v6  ;;  %v683_v33 = vld [vmem:[%s1155_s4] ss:$0 sm:$0xff] }
  0x16   : > { %747 = vmatprep.subr.bf16.mxu1 %v909_v1  ;;  %v692_v41 = vld [vmem:[%s1157_s6] ss:$0 sm:$0xff]  ;;  %s598_s28 = scalar_lea.sflag [#allocation3], %s267_s22  ;;  %p847_p12 = pnand %p846_p11, %p990_p5 }
  0x17   : > { %s675_s29 = sshll.u32 %s271_s19, 3  ;;  %734 = vmatpush3.bf16.msra.mxu0 %v826_v5  ;;  %s911_s19 = smov [#allocation2]  }
  0x18   : > { %s273_s15 = scalar_lea.vmem %s1151_s0, %s675_s29  ;;  %735 = vmatprep.subr.bf16.mxu0 %v909_v1  ;;  %p848_p13 = pneg %p847_p12 }
  0x19   : > { %v275_v10 = vld [vmem:[%s273_s15] sm:$0xff]  ;;  %748 = vmatpush3.bf16.msra.mxu1 %v831_v9  ;;  %s849_s20 = sshll.u32 %s911_s19, 4  ;;  %s850_s20 = int_to_ptr.vmem [resolvable:$false] %s849_s20 }
  0x1a   : > { %749 = vmatprep.subr.bf16.mxu1 %v909_v1  ;;  %v276_v12 = vpack.c.bf16 %v275_v10, %v275_v10  ;;  %s851_s21 = scalar_lea.vmem %s850_s20, 256  ;;  %p852_p0 = scmp.lt.s32.totalorder %s1111_s14, %s850_s20 }
  0x1b   : > { %736 = vmatpush3.bf16.msra.mxu0 %v827_v7  ;;  %p853_p1 = scmp.lt.s32.totalorder %s851_s21, %s845_s18 }
  0x1c   : > { %737 = vmatprep.subr.bf16.mxu0 %v909_v1 }
  0x1d   : > { %750 = vmatpush3.bf16.msra.mxu1 %v832_v11  ;;  %p854_p2 = por %p853_p1, %p852_p0 }
  0x1e   : > { %751 = vmatprep.subr.bf16.mxu1 %v909_v1 }
  0x1f   : > { %738 = vmatpush3.bf16.msra.mxu0 %v326_v8  ;;  %p855_p3 = pnand %p854_p2, %p848_p13 }
  0x20   : > { %763 = vmatprep.subr.bf16.mxu0 %v909_v1 }
  0x21   : > { %752 = vmatpush3.bf16.msra.mxu1 %v833_v13 }
  0x22   : > { %740 = vmatmul.mubr.msk.bf16.vlgmr.msra.gmra.mrb[0].mxu0 %vm320_vm2, %v276_v12  ;;  %753 = vmatprep.subr.bf16.mxu1 %v909_v1 }
  0x23   : > { %779 = vmatprep.mubr.msk.bf16.mxu0 %vm910_vm0, %v909_v1  ;;  %764 = vmatpush3.bf16.msra.mxu0 %v837_v17 }
  0x24   : > { %765 = vmatprep.subr.bf16.mxu0 %v909_v1 }
  0x25   : > { %754 = vmatpush3.bf16.msra.mxu1 %v834_v14 }
  0x26   : > { %755 = vmatprep.subr.bf16.mxu1 %v909_v1 }
  0x27   : > { %766 = vmatpush3.bf16.msra.mxu0 %v838_v18 }
  0x28   : > { %767 = vmatprep.subr.bf16.mxu0 %v909_v1 }
  0x29   : > { %756 = vmatpush3.bf16.msra.mxu1 %v835_v15 }
  0x2a   : > { %757 = vmatprep.subr.bf16.mxu1 %v909_v1 }
  0x2b   : > { %768 = vmatpush3.bf16.msra.mxu0 %v839_v19 }
  0x2c   : > { %769 = vmatprep.subr.bf16.mxu0 %v909_v1 }
  0x2d   : > { %758 = vmatpush3.bf16.msra.mxu1 %v836_v16 }
  0x2f   : > { %770 = vmatpush3.bf16.msra.mxu0 %v840_v20 }
  0x30   : > { %771 = vmatprep.subr.bf16.mxu0 %v909_v1 }
  0x33   : > { %772 = vmatpush3.bf16.msra.mxu0 %v841_v21 }
  0x34   : > { %773 = vmatprep.subr.bf16.mxu0 %v909_v1 }
  0x37   : > { %774 = vmatpush3.bf16.msra.mxu0 %v842_v22 }
  0x38   : > { %775 = vmatprep.subr.bf16.mxu0 %v909_v1 }
  0x3b   : > { %776 = vmatpush3.bf16.msra.mxu0 %v843_v31 }
  0x3c   : > { %777 = vmatprep.subr.bf16.mxu0 %v909_v1 }
  0x3f   : > { %778 = vmatpush3.bf16.msra.mxu0 %v844_v32 }
  0xf5   : > { %v362_v24 = vpop.f32.mrb[0].mxu0 }
  0xf6   : > { %v363_v25 = vadd.f32 %v676_v23, %v362_v24  ;;  %v741_v26 = vpop.f32.mrb[1].mxu0 }
  0xf7   : > { %v365_v27 = vpop.f32.mrb[2].mxu0 }
  0xf8   : > { %v368_v28 = vmax.f32 %v363_v25, 0.0  ;;  %v742_v29 = vpop.f32.mrb[3].mxu0 }
  0xfa   : > { %v369_v30 = vpack.c.bf16 %v368_v28, %v368_v28 }
  0xfc   : > { %760 = vmatmul.mubr.bf16.vlgmr.msra.gmra.mrb[0].mxu1 %v369_v30 }
 0x1cf   : > { %v475_v34 = vpop.f32.mrb[0].mxu1 }
 0x1d0   : > { %v476_v35 = vadd.f32 %v683_v33, %v475_v34  ;;  %v761_v36 = vpop.f32.mrb[1].mxu1 }
 0x1d1   : > { %v478_v37 = vpop.f32.mrb[2].mxu1 }
 0x1d2   : > { %v481_v38 = vmax.f32 %v476_v35, 0.0  ;;  %v762_v39 = vpop.f32.mrb[3].mxu1 }
 0x1d4   : > { %v482_v40 = vpack.c.bf16 %v481_v38, %v481_v38 }
 0x1d6   : > { %780 = vmatmul.mubr.bf16.vlgmr.msra.gmra.mrb[4].mxu0 %v482_v40 }
 0x2a9   : > { %v588_v42 = vpop.f32.mrb[4].mxu0 }
 0x2aa   : > { %v589_v43 = vadd.f32 %v692_v41, %v588_v42  ;;  %v781_v44 = vpop.f32.mrb[5].mxu0 }
 0x2ab   : > { %v591_v45 = vpop.f32.mrb[6].mxu0 }
 0x2ac   : > { %v594_v46 = vmax.f32 %v589_v43, 0.0  ;;  %v782_v47 = vpop.f32.mrb[7].mxu0 }
 0x2ae   : > { %596 = vst.msk [vmem:[%s269_s13] sm:$0xff] %vm595_vm3, %v594_v46 }
 0x2af   : > { %858 = shalt.err (!%p855_p3)
}
 0x2b0   : > { %s859_s22 = scalar_lea.hbm %s1109_s17, 128  ;;  %s863_s8 = scalar_lea.hbm %s1158_s7, 256 }
 0x2b1   : > { %p860_p4 = scmp.ne.s32.totalorder %s1109_s17, %s859_s22  ;;  %p864_p9 = scmp.lt.u32.totalorder %s1109_s17, %s1158_s7 }
 0x2b2   : > { %p865_p10 = scmp.lt.u32.totalorder %s863_s8, %s859_s22  ;;  %p867_p12 = scmp.lt.u32.totalorder %s859_s22, %s1109_s17 }
 0x2b3   : > { %p861_p7 = pnand %p860_p4, %p990_p5 }
 0x2b4   : > { %p866_p11 = por %p865_p10, %p864_p9 }
 0x2b5   : > { %p862_p8 = pneg %p861_p7 }
 0x2b6   : > { %p868_p13 = por %p867_p12, %p866_p11 }
 0x2b8   : > { %p869_p0 = pnand %p868_p13, %p862_p8 }
 0x2ba   : > { %872 = shalt.err (!%p869_p0)
}
 0x2bb   : > { %783 = dma.vmem_to_hbm [thread:$0]  (%p990_p5), %s1111_s14, 128, %s1109_s17, %s598_s28  }
 0x2bc PF: > { %p789_p1 = scmp.ge.s32.totalorder %s907_s27, 2  ;;  %s623_s15 = sand.u32 1, %s895_s24  }
 0x2bd   : > { %s624_s16 = scalar_lea.sflag [#allocation3], %s623_s15 }
 0x2be   : > { %p786_p2 = pnand %p789_p1, %p994_p6 }
 0x2c0   : > { %890 = dma.done.wait (!%p786_p2), %s624_s16, 128  }
 0x2c1   : > { %892 = vsyncadd (!%p786_p2), %s624_s16, 4294967168  ;;  %p17_p3 = scmp.ge.s32.totalorder %s977_s30, 4   ;;  %s1161_s24 = smov %s899_s25 }
 0x2c2   : > { %s1162_s25 = smov %s903_s26  ;;  %s1163_s26 = smov %s988_s10 }
 0x2c3   : > { %s1164_s27 = smov %s977_s30  ;;  %19 = sbr.rel (!%p17_p3) target bundleno = 3 (0x3), region = 83 }
 0x2ca   :  { %629 = vsyncpa [#allocation3], 1 }
 0x2cb   :  { %631 = vsyncpa [#allocation3 + $0x1], 1 }

</bundles_post_ra>
